<compile_context>
chip_gen: v6e
topology: v6e:2x2x1
jax: 0.10.0
libtpu: 0.0.40
codegen_flags: <defaults>
</compile_context>

<pallas_src>
import functools

import jax
import jax.numpy as jnp
from jax.experimental import pallas as pl
from jax.experimental.pallas import tpu as pltpu


def _round_up(x, m):
    return ((x + m - 1) // m) * m


# ------------------ fused encoder + decode + generate kernel ------------------
def _fused_kernel(src_ref, dec_ref, mask_ref,
                  wenc_ref, benc_ref, wde_ref, wq_ref, wc_ref, wgen_ref, bgen_ref,
                  scores_ref, *, softmax, mxu_dtype):
    f32 = jnp.float32
    TB, Sp, F_in = src_ref.shape
    Hp = wenc_ref.shape[1]

    # --- encoder (fused): memory_bank = tanh(src @ W_enc + b_enc), position-wise ---
    # (TB, Sp, F_in) -> (TB*Sp, F_in) is a metadata-only reshape (Sp % 8 == 0), so this
    # is a plain 2-D MXU matmul; memory_bank lives only in VMEM for this B-tile.
    src2d = src_ref[...].reshape(TB * Sp, F_in)
    mb2d = jnp.tanh(
        jnp.dot(src2d.astype(mxu_dtype), wenc_ref[...].astype(mxu_dtype),
                preferred_element_type=f32) + benc_ref[...])
    mb_m = mb2d.reshape(TB, Sp, Hp).astype(mxu_dtype)            # (TB, Sp, Hp)

    # --- decoder "embedding" of the last step's input ---
    # TODO(synk): the real model embeds integer token ids; replaced by a dense projection.
    q = jnp.tanh(jnp.dot(dec_ref[...].astype(mxu_dtype), wde_ref[...].astype(mxu_dtype),
                         preferred_element_type=f32))            # (TB, Hp)
    q3 = q[:, None, :]                                           # single expand, reused

    # --- src attention ("std"): MXU batched contractions, precomputed additive mask ---
    e = jnp.einsum('bqh,bsh->bqs', q3.astype(mxu_dtype), mb_m,
                   preferred_element_type=f32) + mask_ref[...]   # (TB, 1, Sp)
    e_max = jnp.max(e, axis=-1, keepdims=True)
    p = jnp.exp(e - e_max)
    attn = p * pl.reciprocal(jnp.sum(p, axis=-1, keepdims=True), approx=True)

    ctx = jnp.einsum('bqs,bsh->bqh', attn.astype(mxu_dtype), mb_m,
                     preferred_element_type=f32)[:, 0, :]        # (TB, Hp), single squeeze

    # --- dec_out = tanh([q ; ctx] @ W_out)  (W_out pre-split into Wq / Wc at trace time) ---
    dec_out = jnp.tanh(
        jnp.dot(q.astype(mxu_dtype), wq_ref[...].astype(mxu_dtype),
                preferred_element_type=f32)
        + jnp.dot(ctx.astype(mxu_dtype), wc_ref[...].astype(mxu_dtype),
                  preferred_element_type=f32))                   # (TB, Hp)

    # --- generator (padded vocab columns carry a -1e30 bias -> vanish from softmax) ---
    logits = jnp.dot(dec_out.astype(mxu_dtype), wgen_ref[...].astype(mxu_dtype),
                     preferred_element_type=f32) + bgen_ref[...] # (TB, Vp)
    l_max = jnp.max(logits, axis=-1, keepdims=True)
    exps = jnp.exp(logits - l_max)
    denom = jnp.sum(exps, axis=-1, keepdims=True)
    if softmax:
        scores_ref[...] = exps * (1.0 / denom)                   # exact normalization
    else:
        scores_ref[...] = (logits - l_max) - jnp.log(denom)


# ---------------------------------- wrapper ----------------------------------
def prediction_wrapper_forward(src, src_lens, decoder_inputs, params,
                               softmax=True, mxu_dtype=jnp.float32):
    """Mirrors PredictionWrapper.forward.

    src:            (B, S, F_in) float32
    src_lens:       (B,) int32 memory lengths
    decoder_inputs: (T, B, F_dec) float32 (one entry per decoding step)
    returns scores of the last step: (B, V) float32
    """
    B, S, F_in = src.shape
    T, _, F_dec = decoder_inputs.shape
    H = params["w_enc"].shape[1]
    V = params["w_gen"].shape[1]

    LANE = 128
    Hp = _round_up(H, LANE)
    Vp = _round_up(V, LANE)
    Sp = _round_up(S, 8)

    # Batch tile: <=128 rows (MXU sweet spot on v5e; raise toward 256 on v6e/v7x for
    # large batches).  If the whole batch would be a single tile, split it so the
    # second TensorCore on v7x gets a grid step.
    TB = min(128, _round_up(B, 8))
    if TB >= 16 and _round_up(B, TB) // TB == 1:
        TB = _round_up((TB + 1) // 2, 8)
    Bp = _round_up(B, TB)

    f32 = jnp.float32
    # --- pad parameters (zero-pad hidden dims; -1e30 bias on padded vocab cols) ---
    w_enc = jnp.zeros((F_in, Hp), f32).at[:, :H].set(params["w_enc"])
    b_enc = jnp.zeros((1, Hp), f32).at[:, :H].set(params["b_enc"])
    w_demb = jnp.zeros((F_dec, Hp), f32).at[:, :H].set(params["w_demb"])
    wq = jnp.zeros((Hp, Hp), f32).at[:H, :H].set(params["w_out"][:H])
    wc = jnp.zeros((Hp, Hp), f32).at[:H, :H].set(params["w_out"][H:2 * H])
    w_gen = jnp.zeros((Hp, Vp), f32).at[:H, :V].set(params["w_gen"])
    b_gen = jnp.full((1, Vp), -1e30, f32).at[:, :V].set(params["b_gen"])

    # --- pad activations; only the LAST decoding step matters (stateless synthetic decoder) ---
    # TODO(synk): a real recurrent/cached decoder needs the full T loop with per-step state.
    src_p = jnp.zeros((Bp, Sp, F_in), f32).at[:B, :S].set(src)
    dec_last = jnp.zeros((Bp, F_dec), f32).at[:B].set(decoder_inputs[T - 1])

    # step-invariant attention mask as an additive bias, pre-shaped (Bp, 1, Sp)
    lens = jnp.full((Bp,), Sp, jnp.int32).at[:B].set(src_lens.astype(jnp.int32))
    mask_bias = jnp.where(jnp.arange(Sp)[None, :] < lens[:, None],
                          0.0, -1e30).astype(f32)[:, None, :]

    resident = dict(pipeline_mode=pl.Buffered(1))   # single-buffer grid-invariant weights

    kernel = functools.partial(_fused_kernel, softmax=softmax, mxu_dtype=mxu_dtype)
    scores_p = pl.pallas_call(
        kernel,
        out_shape=jax.ShapeDtypeStruct((Bp, Vp), f32),
        grid_spec=pltpu.PrefetchScalarGridSpec(
            num_scalar_prefetch=0,
            grid=(Bp // TB,),                                   # parallel B-tiles
            in_specs=[
                pl.BlockSpec((TB, Sp, F_in), lambda b: (b, 0, 0)),   # src tile
                pl.BlockSpec((TB, F_dec), lambda b: (b, 0)),         # last-step dec input
                pl.BlockSpec((TB, 1, Sp), lambda b: (b, 0, 0)),      # mask bias
                pl.BlockSpec((F_in, Hp), lambda b: (0, 0), **resident),
                pl.BlockSpec((1, Hp), lambda b: (0, 0), **resident),
                pl.BlockSpec((F_dec, Hp), lambda b: (0, 0), **resident),
                pl.BlockSpec((Hp, Hp), lambda b: (0, 0), **resident),
                pl.BlockSpec((Hp, Hp), lambda b: (0, 0), **resident),
                pl.BlockSpec((Hp, Vp), lambda b: (0, 0), **resident),
                pl.BlockSpec((1, Vp), lambda b: (0, 0), **resident),
            ],
            out_specs=pl.BlockSpec((TB, Vp), lambda b: (b, 0)),      # lane-dense scores slab
        ),
        compiler_params=pltpu.CompilerParams(
            dimension_semantics=("parallel",),
            vmem_limit_bytes=48 * 1024 * 1024),   # headroom on v7x's 64 MiB/TC
    )(src_p, dec_last, mask_bias, w_enc, b_enc, w_demb, wq, wc, w_gen, b_gen)

    return scores_p[:B, :V]


# --------------------------- pure-JAX reference -------------------------------
def _reference_forward(src, src_lens, decoder_inputs, params, softmax=True):
    src_t = jnp.transpose(src, (1, 0, 2))
    S, B, F = src_t.shape
    H = params["w_enc"].shape[1]
    mb = jnp.tanh(src_t.reshape(S * B, F) @ params["w_enc"] + params["b_enc"]).reshape(S, B, H)
    mb = jnp.transpose(mb, (1, 0, 2))                           # (B, S, H)
    lens = src_lens.astype(jnp.int32)
    scores = None
    for i in range(decoder_inputs.shape[0]):
        q = jnp.tanh(decoder_inputs[i] @ params["w_demb"])      # (B, H)
        e = jnp.einsum("bh,bsh->bs", q, mb)
        mask = jnp.arange(S)[None, :] < lens[:, None]
        e = jnp.where(mask, e, -1e30)
        attn = jax.nn.softmax(e, axis=-1)
        ctx = jnp.einsum("bs,bsh->bh", attn, mb)
        dec_out = jnp.tanh(jnp.concatenate([q, ctx], axis=-1) @ params["w_out"])
        logits = dec_out @ params["w_gen"] + params["b_gen"]
        scores = jax.nn.softmax(logits, -1) if softmax else jax.nn.log_softmax(logits, -1)
    return scores


# ----------------------------------- main -------------------------------------
if __name__ == "__main__":
    B, S, T = 2, 16, 4         # batch, src_len, decoder steps
    F_in, F_dec = 8, 8         # encoder / decoder input feature dims
    H, V = 32, 32              # hidden size, vocab size

    key = jax.random.PRNGKey(0)
    k = jax.random.split(key, 8)
    params = {
        "w_enc":  0.1 * jax.random.normal(k[0], (F_in, H), jnp.float32),
        "b_enc":  0.1 * jax.random.normal(k[1], (1, H), jnp.float32),
        "w_demb": 0.1 * jax.random.normal(k[2], (F_dec, H), jnp.float32),
        "w_out":  0.1 * jax.random.normal(k[3], (2 * H, H), jnp.float32),
        "w_gen":  0.1 * jax.random.normal(k[4], (H, V), jnp.float32),
        "b_gen":  0.1 * jax.random.normal(k[5], (1, V), jnp.float32),
    }
    src = jax.random.normal(k[6], (B, S, F_in), jnp.float32)
    decoder_inputs = jax.random.normal(k[7], (T, B, F_dec), jnp.float32)
    src_lens = jnp.array([S, S - 5], dtype=jnp.int32)

    # f32 MXU operands so the tight f32 reference check passes; use
    # mxu_dtype=jnp.bfloat16 at production shapes on v6e/v7x (f32 accumulation kept).
    scores = prediction_wrapper_forward(src, src_lens, decoder_inputs, params,
                                        softmax=True, mxu_dtype=jnp.float32)
    scores = jax.block_until_ready(scores)

    ref = _reference_forward(src, src_lens, decoder_inputs, params, softmax=True)
    assert scores.shape == (B, V)
    assert jnp.allclose(scores, ref, atol=2e-3, rtol=2e-3), "mismatch vs pure-JAX reference"

    print("KERNEL_OK")
</pallas_src>

<mosaic_0001>
module attributes {stable_mosaic.version = 11 : i64} {
  func.func @_fused_kernel(%arg0: i32, %arg1: memref<8x16x8xf32, #tpu.memory_space<vmem>>, %arg2: memref<8x8xf32, #tpu.memory_space<vmem>>, %arg3: memref<8x1x16xf32, #tpu.memory_space<vmem>>, %arg4: memref<8x128xf32, #tpu.memory_space<vmem>>, %arg5: memref<1x128xf32, #tpu.memory_space<vmem>>, %arg6: memref<8x128xf32, #tpu.memory_space<vmem>>, %arg7: memref<128x128xf32, #tpu.memory_space<vmem>>, %arg8: memref<128x128xf32, #tpu.memory_space<vmem>>, %arg9: memref<128x128xf32, #tpu.memory_space<vmem>>, %arg10: memref<1x128xf32, #tpu.memory_space<vmem>>, %arg11: memref<8x128xf32, #tpu.memory_space<vmem>>) attributes {dimension_semantics = [#tpu.dimension_semantics<parallel>], iteration_bounds = array<i64: 1>, scalar_prefetch = 0 : i64, scratch_operands = 0 : i64, tpu.core_type = #tpu.core_type<tc>, window_params = [{transform_indices = @transform_0, window_bounds = array<i64: 8, 16, 8>}, {transform_indices = @transform_1, window_bounds = array<i64: 8, 8>}, {transform_indices = @transform_2, window_bounds = array<i64: 8, 1, 16>}, {pipeline_mode = #tpu.pipeline_mode<synchronous>, transform_indices = @transform_3, window_bounds = array<i64: 8, 128>}, {pipeline_mode = #tpu.pipeline_mode<synchronous>, transform_indices = @transform_4, window_bounds = array<i64: 1, 128>}, {pipeline_mode = #tpu.pipeline_mode<synchronous>, transform_indices = @transform_5, window_bounds = array<i64: 8, 128>}, {pipeline_mode = #tpu.pipeline_mode<synchronous>, transform_indices = @transform_6, window_bounds = array<i64: 128, 128>}, {pipeline_mode = #tpu.pipeline_mode<synchronous>, transform_indices = @transform_7, window_bounds = array<i64: 128, 128>}, {pipeline_mode = #tpu.pipeline_mode<synchronous>, transform_indices = @transform_8, window_bounds = array<i64: 128, 128>}, {pipeline_mode = #tpu.pipeline_mode<synchronous>, transform_indices = @transform_9, window_bounds = array<i64: 1, 128>}, {transform_indices = @transform_10, window_bounds = array<i64: 8, 128>}]} {
    %c0 = arith.constant 0 : index
    %c0_0 = arith.constant 0 : index
    %c0_1 = arith.constant 0 : index
    %0 = vector.load %arg1[%c0, %c0_0, %c0_1] : memref<8x16x8xf32, #tpu.memory_space<vmem>>, vector<8x16x8xf32>
    %1 = vector.shape_cast %0 : vector<8x16x8xf32> to vector<128x8xf32>
    %c0_2 = arith.constant 0 : index
    %c0_3 = arith.constant 0 : index
    %2 = vector.load %arg4[%c0_2, %c0_3] : memref<8x128xf32, #tpu.memory_space<vmem>>, vector<8x128xf32>
    %cst = arith.constant dense<0.000000e+00> : vector<128x128xf32>
    %3 = tpu.matmul %1, %2, %cst {dimension_numbers = #tpu.dot_dimension_numbers<[1], [0], [0], [1], [0, 0, 1, 1], [], []>} : vector<128x8xf32>, vector<8x128xf32>, vector<128x128xf32> -> vector<128x128xf32>
    %c0_4 = arith.constant 0 : index
    %c0_5 = arith.constant 0 : index
    %4 = vector.load %arg5[%c0_4, %c0_5] : memref<1x128xf32, #tpu.memory_space<vmem>>, vector<1x128xf32>
    %5 = vector.broadcast %4 : vector<1x128xf32> to vector<128x128xf32>
    %6 = arith.addf %3, %5 : vector<128x128xf32>
    %7 = math.tanh %6 : vector<128x128xf32>
    %8 = vector.shape_cast %7 : vector<128x128xf32> to vector<8x16x128xf32>
    %c0_6 = arith.constant 0 : index
    %c0_7 = arith.constant 0 : index
    %9 = vector.load %arg2[%c0_6, %c0_7] : memref<8x8xf32, #tpu.memory_space<vmem>>, vector<8x8xf32>
    %c0_8 = arith.constant 0 : index
    %c0_9 = arith.constant 0 : index
    %10 = vector.load %arg6[%c0_8, %c0_9] : memref<8x128xf32, #tpu.memory_space<vmem>>, vector<8x128xf32>
    %cst_10 = arith.constant dense<0.000000e+00> : vector<8x128xf32>
    %11 = tpu.matmul %9, %10, %cst_10 {dimension_numbers = #tpu.dot_dimension_numbers<[1], [0], [0], [1], [0, 0, 1, 1], [], []>} : vector<8x8xf32>, vector<8x128xf32>, vector<8x128xf32> -> vector<8x128xf32>
    %12 = math.tanh %11 : vector<8x128xf32>
    %13 = vector.shape_cast %12 : vector<8x128xf32> to vector<8x1x128xf32>
    "tpu.trace_start"() <{level = 10 : i32, message = "bqh,bsh->bqs"}> : () -> ()
    %cst_11 = arith.constant dense<0.000000e+00> : vector<8x1x16xf32>
    %14 = tpu.matmul %13, %8, %cst_11 {dimension_numbers = #tpu.dot_dimension_numbers<[2], [2], [1], [1], [0, 0, 0, 1, 1, 1], [0], [0]>} : vector<8x1x128xf32>, vector<8x16x128xf32>, vector<8x1x16xf32> -> vector<8x1x16xf32>
    "tpu.trace_stop"() : () -> ()
    %c0_12 = arith.constant 0 : index
    %c0_13 = arith.constant 0 : index
    %c0_14 = arith.constant 0 : index
    %15 = vector.load %arg3[%c0_12, %c0_13, %c0_14] : memref<8x1x16xf32, #tpu.memory_space<vmem>>, vector<8x1x16xf32>
    %16 = arith.addf %14, %15 : vector<8x1x16xf32>
    %cst_15 = arith.constant dense<0xFF800000> : vector<8x1xf32>
    %17 = vector.multi_reduction <maximumf>, %16, %cst_15 [2] : vector<8x1x16xf32> to vector<8x1xf32>
    %18 = vector.shape_cast %17 : vector<8x1xf32> to vector<8x1x1xf32>
    %19 = vector.broadcast %18 : vector<8x1x1xf32> to vector<8x1x16xf32>
    %20 = arith.subf %16, %19 : vector<8x1x16xf32>
    %21 = math.exp %20 : vector<8x1x16xf32>
    %cst_16 = arith.constant dense<0.000000e+00> : vector<8x1xf32>
    %22 = vector.multi_reduction <add>, %21, %cst_16 [2] : vector<8x1x16xf32> to vector<8x1xf32>
    %23 = vector.shape_cast %22 : vector<8x1xf32> to vector<8x1x1xf32>
    %24 = tpu.reciprocal %23 {approx = true} : vector<8x1x1xf32> -> vector<8x1x1xf32>
    %25 = vector.broadcast %24 : vector<8x1x1xf32> to vector<8x1x16xf32>
    %26 = arith.mulf %21, %25 : vector<8x1x16xf32>
    "tpu.trace_start"() <{level = 10 : i32, message = "bqs,bsh->bqh"}> : () -> ()
    %cst_17 = arith.constant dense<0.000000e+00> : vector<8x1x128xf32>
    %27 = tpu.matmul %26, %8, %cst_17 {dimension_numbers = #tpu.dot_dimension_numbers<[2], [1], [1], [2], [0, 0, 0, 1, 1, 2], [0], [0]>} : vector<8x1x16xf32>, vector<8x16x128xf32>, vector<8x1x128xf32> -> vector<8x1x128xf32>
    "tpu.trace_stop"() : () -> ()
    %28 = vector.shape_cast %27 : vector<8x1x128xf32> to vector<8x128xf32>
    %c0_18 = arith.constant 0 : index
    %c0_19 = arith.constant 0 : index
    %29 = vector.load %arg7[%c0_18, %c0_19] : memref<128x128xf32, #tpu.memory_space<vmem>>, vector<128x128xf32>
    %cst_20 = arith.constant dense<0.000000e+00> : vector<8x128xf32>
    %30 = tpu.matmul %12, %29, %cst_20 {dimension_numbers = #tpu.dot_dimension_numbers<[1], [0], [0], [1], [0, 0, 1, 1], [], []>} : vector<8x128xf32>, vector<128x128xf32>, vector<8x128xf32> -> vector<8x128xf32>
    %c0_21 = arith.constant 0 : index
    %c0_22 = arith.constant 0 : index
    %31 = vector.load %arg8[%c0_21, %c0_22] : memref<128x128xf32, #tpu.memory_space<vmem>>, vector<128x128xf32>
    %cst_23 = arith.constant dense<0.000000e+00> : vector<8x128xf32>
    %32 = tpu.matmul %28, %31, %cst_23 {dimension_numbers = #tpu.dot_dimension_numbers<[1], [0], [0], [1], [0, 0, 1, 1], [], []>} : vector<8x128xf32>, vector<128x128xf32>, vector<8x128xf32> -> vector<8x128xf32>
    %33 = arith.addf %30, %32 : vector<8x128xf32>
    %34 = math.tanh %33 : vector<8x128xf32>
    %c0_24 = arith.constant 0 : index
    %c0_25 = arith.constant 0 : index
    %35 = vector.load %arg9[%c0_24, %c0_25] : memref<128x128xf32, #tpu.memory_space<vmem>>, vector<128x128xf32>
    %cst_26 = arith.constant dense<0.000000e+00> : vector<8x128xf32>
    %36 = tpu.matmul %34, %35, %cst_26 {dimension_numbers = #tpu.dot_dimension_numbers<[1], [0], [0], [1], [0, 0, 1, 1], [], []>} : vector<8x128xf32>, vector<128x128xf32>, vector<8x128xf32> -> vector<8x128xf32>
    %c0_27 = arith.constant 0 : index
    %c0_28 = arith.constant 0 : index
    %37 = vector.load %arg10[%c0_27, %c0_28] : memref<1x128xf32, #tpu.memory_space<vmem>>, vector<1x128xf32>
    %38 = vector.broadcast %37 : vector<1x128xf32> to vector<8x128xf32>
    %39 = arith.addf %36, %38 : vector<8x128xf32>
    %cst_29 = arith.constant dense<0xFF800000> : vector<8xf32>
    %40 = vector.multi_reduction <maximumf>, %39, %cst_29 [1] : vector<8x128xf32> to vector<8xf32>
    %41 = vector.shape_cast %40 : vector<8xf32> to vector<8x1xf32>
    %42 = vector.broadcast %41 : vector<8x1xf32> to vector<8x128xf32>
    %43 = arith.subf %39, %42 : vector<8x128xf32>
    %44 = math.exp %43 : vector<8x128xf32>
    %cst_30 = arith.constant dense<0.000000e+00> : vector<8xf32>
    %45 = vector.multi_reduction <add>, %44, %cst_30 [1] : vector<8x128xf32> to vector<8xf32>
    %46 = vector.shape_cast %45 : vector<8xf32> to vector<8x1xf32>
    %cst_31 = arith.constant 1.000000e+00 : f32
    %47 = vector.broadcast %cst_31 : f32 to vector<8x1xf32>
    %48 = arith.divf %47, %46 : vector<8x1xf32>
    %49 = vector.broadcast %48 : vector<8x1xf32> to vector<8x128xf32>
    %50 = arith.mulf %44, %49 : vector<8x128xf32>
    %c0_32 = arith.constant 0 : index
    %c0_33 = arith.constant 0 : index
    %51 = vector.load %arg11[%c0_32, %c0_33] : memref<8x128xf32, #tpu.memory_space<vmem>>, vector<8x128xf32>
    tpu.vector_store %arg11[%c0_32, %c0_33], %50 {strides = array<i32>} : memref<8x128xf32, #tpu.memory_space<vmem>>, vector<8x128xf32>,
    return
  }
  func.func @transform_0(%arg0: i32) -> (i32, i32, i32) {
    %c0_i32 = arith.constant 0 : i32
    %c0_i32_0 = arith.constant 0 : i32
    %c0_i32_1 = arith.constant 0 : i32
    return %arg0, %c0_i32, %c0_i32_0 : i32, i32, i32
  }
  func.func @transform_1(%arg0: i32) -> (i32, i32) {
    %c0_i32 = arith.constant 0 : i32
    %c0_i32_0 = arith.constant 0 : i32
    return %arg0, %c0_i32 : i32, i32
  }
  func.func @transform_2(%arg0: i32) -> (i32, i32, i32) {
    %c0_i32 = arith.constant 0 : i32
    %c0_i32_0 = arith.constant 0 : i32
    %c0_i32_1 = arith.constant 0 : i32
    return %arg0, %c0_i32, %c0_i32_0 : i32, i32, i32
  }
  func.func @transform_3(%arg0: i32) -> (i32, i32) {
    %c0_i32 = arith.constant 0 : i32
    %c0_i32_0 = arith.constant 0 : i32
    %c0_i32_1 = arith.constant 0 : i32
    return %c0_i32, %c0_i32_0 : i32, i32
  }
  func.func @transform_4(%arg0: i32) -> (i32, i32) {
    %c0_i32 = arith.constant 0 : i32
    %c0_i32_0 = arith.constant 0 : i32
    %c0_i32_1 = arith.constant 0 : i32
    return %c0_i32, %c0_i32_0 : i32, i32
  }
  func.func @transform_5(%arg0: i32) -> (i32, i32) {
    %c0_i32 = arith.constant 0 : i32
    %c0_i32_0 = arith.constant 0 : i32
    %c0_i32_1 = arith.constant 0 : i32
    return %c0_i32, %c0_i32_0 : i32, i32
  }
  func.func @transform_6(%arg0: i32) -> (i32, i32) {
    %c0_i32 = arith.constant 0 : i32
    %c0_i32_0 = arith.constant 0 : i32
    %c0_i32_1 = arith.constant 0 : i32
    return %c0_i32, %c0_i32_0 : i32, i32
  }
  func.func @transform_7(%arg0: i32) -> (i32, i32) {
    %c0_i32 = arith.constant 0 : i32
    %c0_i32_0 = arith.constant 0 : i32
    %c0_i32_1 = arith.constant 0 : i32
    return %c0_i32, %c0_i32_0 : i32, i32
  }
  func.func @transform_8(%arg0: i32) -> (i32, i32) {
    %c0_i32 = arith.constant 0 : i32
    %c0_i32_0 = arith.constant 0 : i32
    %c0_i32_1 = arith.constant 0 : i32
    return %c0_i32, %c0_i32_0 : i32, i32
  }
  func.func @transform_9(%arg0: i32) -> (i32, i32) {
    %c0_i32 = arith.constant 0 : i32
    %c0_i32_0 = arith.constant 0 : i32
    %c0_i32_1 = arith.constant 0 : i32
    return %c0_i32, %c0_i32_0 : i32, i32
  }
  func.func @transform_10(%arg0: i32) -> (i32, i32) {
    %c0_i32 = arith.constant 0 : i32
    %c0_i32_0 = arith.constant 0 : i32
    return %arg0, %c0_i32 : i32, i32
  }
}

</mosaic_0001>

<bundles_post_ra>
// kernel: tpu_custom_call.1
= control target key start
LH: loop header
LB: loop body
LE: loop exit
PB: predicated region body
PF: predicated region fallthrough
CT: control target
= control target key end

     0   :  { %15 = vsyncpa [#allocation3], 0  ;;  %s3012_s0 = inlined_call_operand.vmem [shape: f32[8,16,8], index: 0, kind: input, shape index: {}]   ;;  %s3013_s1 = inlined_call_operand.vmem [shape: f32[8,8], index: 1, kind: input, shape index: {}]   ;;  %s3014_s2 = inlined_call_operand.vmem [shape: f32[8,1,16], index: 2, kind: input, shape index: {}]   ;;  %s3015_s3 = inlined_call_operand.vmem [shape: f32[8,128], index: 3, kind: input, shape index: {}]   ;;  %s3016_s4 = inlined_call_operand.vmem [shape: f32[1,128], index: 4, kind: input, shape index: {}]   ;;  %s3017_s5 = inlined_call_operand.vmem [shape: f32[8,128], index: 5, kind: input, shape index: {}]   ;;  %s3018_s6 = inlined_call_operand.vmem [shape: f32[128,128], index: 6, kind: input, shape index: {}]   ;;  %s3019_s7 = inlined_call_operand.hbm [shape: f32[128,128], index: 7, kind: input, shape index: {}]   ;;  %s3020_s8 = inlined_call_operand.hbm [shape: f32[128,128], index: 8, kind: input, shape index: {}]   ;;  %s3021_s9 = inlined_call_operand.vmem [shape: f32[1,128], index: 9, kind: input, shape index: {}]   ;;  %s3022_s10 = inlined_call_operand.hbm [shape: f32[8,128], index: 10, kind: output, shape index: {}]  }
   0x1   :  { %16 = vsyncpa [#allocation6], 0 }
   0x2   :  { %17 = vsyncpa [#allocation4], 0  ;;  %s2538_s13 = smov [#allocation2]  }
   0x3   :  { %s37_s14 = sshll.u32 %s2538_s13, 4  ;;  %s38_s14 = int_to_ptr.vmem [resolvable:$true] %s37_s14 }
   0x4   :  { %s2480_s15 = scalar_lea.vmem %s38_s14, 2048  ;;  %p2485_p1 = scmp.lt.s32.totalorder %s38_s14, %s38_s14 }
   0x5   :  { %p2481_p0 = scmp.ne.s32.totalorder %s38_s14, %s2480_s15  ;;  %p2486_p2 = scmp.lt.s32.totalorder %s2480_s15, %s2480_s15 }
   0x7   :  { %p2487_p3 = por %p2486_p2, %p2485_p1 }
   0x9   :  { %p2488_p4 = pnand %p2487_p3, %p2481_p0 }
   0xb   :  { %2491 = shalt.err (!%p2488_p4)
}
   0xc   :  { %s2539_s16 = smov 128   ;;  %s2540_s17 = smov 8  }
   0xd   :  { %43 = dma.hbm_to_vmem [thread:$0]  %s3019_s7, 2048, %s38_s14, [#allocation3], %s2539_s16, %s2539_s16, %s2540_s17  }
   0xe   :  { %s2541_s20 = smov [#allocation5]  }
   0xf   :  { %s49_s21 = sshll.u32 %s2541_s20, 4  ;;  %s50_s21 = int_to_ptr.vmem [resolvable:$true] %s49_s21 }
  0x10   :  { %s2500_s22 = scalar_lea.vmem %s50_s21, 2048  ;;  %p2505_p6 = scmp.lt.s32.totalorder %s50_s21, %s50_s21 }
  0x11   :  { %p2501_p5 = scmp.ne.s32.totalorder %s50_s21, %s2500_s22  ;;  %p2506_p7 = scmp.lt.s32.totalorder %s2500_s22, %s2500_s22 }
  0x13   :  { %p2507_p8 = por %p2506_p7, %p2505_p6 }
  0x15   :  { %p2508_p9 = pnand %p2507_p8, %p2501_p5 }
  0x17   :  { %2511 = shalt.err (!%p2508_p9)
}
  0x18   :  { %55 = dma.hbm_to_vmem [thread:$0]  %s3020_s8, 2048, %s50_s21, [#allocation6], %s2539_s16, %s2539_s16, %s2540_s17  }
  0x19   :  { %2532 = dma.done.wait [#allocation3], 2048  }
  0x1a   :  { %2533 = vsyncadd [#allocation3], 4294965248 }
  0x1b   :  { %2534 = dma.done.wait [#allocation6], 2048  }
  0x1c   :  { %2535 = vsyncadd [#allocation6], 4294965248  ;;  %vm88_vm0 = vcmask 64512   ;;  %v80_v0 = vld [vmem:[%s3015_s3] sm:$0xff]  ;;  %v73_v2 = vld [vmem:[%s3012_s0 + $0x48] sm:$0xff]  ;;  %v2542_v6 = vmov 0.0   ;;  %v379_v48 = vlaneseq }
  0x1d   :  { %v72_v1 = vld [vmem:[%s3012_s0 + $0x40] sm:$0xff]  ;;  %2390 = vmatprep.subr.mxu1 %v80_v0  ;;  %2142 = vmatprep.subr.mxu0 %v80_v0  ;;  %v65_v5 = vld [vmem:[%s3012_s0 + $0x8] sm:$0xff]  ;;  %v74_v7 = vld [vmem:[%s3012_s0 + $0x50] sm:$0xff]  ;;  %vm2543_vm1 = vmmov 0   ;;  %v2544_v46 = vmov 1966171168  }
  0x1e   :  { %2156 = vmatprep.mubr.msk.f32.mxu1 %vm88_vm0, %v72_v1  ;;  %v64_v3 = vld [vmem:[%s3012_s0] sm:$0xff]  ;;  %2391 = vmatpush3.msra.mxu1 %v80_v0  ;;  %v66_v8 = vld [vmem:[%s3012_s0 + $0x10] sm:$0xff]  ;;  %v75_v9 = vld [vmem:[%s3012_s0 + $0x58] sm:$0xff]  ;;  %v377_v47 = vunpack.c.l.s4 %v2544_v46  ;;  %v380_v52 = vshrl.u32 %v379_v48, 7  ;;  %vm1000_vm2 = vcmask 122880   ;;  %vm1089_vm3 = vcmask 130048  }
  0x1f   :  { %v299_v4 = vld [vmem:[%s3017_s5] sm:$0xff]  ;;  %2157 = vmatmul.mubr.msk.f32.vlgmr.msra.gmra.mxu1 %vm88_vm0, %v73_v2  ;;  %2168 = vmatprep.subr.mxu1 %v2542_v6  ;;  %v67_v11 = vld [vmem:[%s3012_s0 + $0x18] sm:$0xff]  ;;  %v77_v13 = vld [vmem:[%s3012_s0 + $0x68] sm:$0xff]  ;;  %vm1715_vm4 = vcmask 1041409   ;;  %vm1718_vm5 = vcmask 1042434   ;;  %vm1721_vm6 = vcmask 1043459  }
  0x20   :  { %2143 = vmatpush3.msra.mxu0 %v80_v0  ;;  %2144 = vmatprep.mubr.msk.f32.mxu0 %vm88_vm0, %v64_v3  ;;  %v76_v10 = vld [vmem:[%s3012_s0 + $0x60] sm:$0xff]  ;;  %v78_v14 = vld [vmem:[%s3012_s0 + $0x70] sm:$0xff]  ;;  %v69_v15 = vld [vmem:[%s3012_s0 + $0x28] sm:$0xff]  ;;  %v378_v51 = vunpack.c.0.s8 %v377_v47  ;;  %vm1724_vm7 = vcmask 1044484   ;;  %vm1727_vm8 = vcmask 1045509   ;;  %vm1730_vm9 = vcmask 1046534  }
  0x21   :  { %2169 = vmatpush3.msra.mxu1 %v299_v4  ;;  %2145 = vmatmul.mubr.msk.f32.vlgmr.msra.gmra.mxu0 %vm88_vm0, %v65_v5  ;;  %v68_v12 = vld [vmem:[%s3012_s0 + $0x20] sm:$0xff]  ;;  %v70_v16 = vld [vmem:[%s3012_s0 + $0x30] sm:$0xff]  ;;  %v79_v17 = vld [vmem:[%s3012_s0 + $0x78] sm:$0xff]  ;;  %vm1733_vm10 = vcmask 1047559   ;;  %s2545_s12 = smov [#allocation7]  }
  0x22   :  { %2159 = vmatprep.mubr.msk.f32.mxu1 %vm88_vm0, %v74_v7  ;;  %2147 = vmatprep.mubr.msk.f32.mxu0 %vm88_vm0, %v66_v8  ;;  %v71_v18 = vld [vmem:[%s3012_s0 + $0x38] sm:$0xff]  ;;  %v298_v19 = vld [vmem:[%s3013_s1] sm:$0xff]  ;;  %v2718_v55 = vsub.s32 %v378_v51, %v380_v52  ;;  %s1987_s3 = sshll.u32 %s2545_s12, 4  ;;  %s1988_s3 = int_to_ptr.vmem [resolvable:$true] %s1987_s3 }
  0x23   :  { %2160 = vmatmul.mubr.msk.f32.gmra.mxu1 %vm88_vm0, %v75_v9  ;;  %2173 = vmatprep.subr.mxu1 %v2542_v6  ;;  %v2693_v21 = vld [vmem:[%s3016_s4] ss:$0 sm:$0xff]  ;;  %v436_v52 = vld [vmem:[%s3014_s2 + $0x4] sm:$0x1]  ;;  %s2512_s13 = scalar_lea.vmem %s1988_s3, 128  ;;  %p2517_p11 = scmp.lt.s32.totalorder %s1988_s3, %s1988_s3 }
  0x24   :  { %2162 = vmatprep.mubr.msk.f32.mxu1 %vm88_vm0, %v76_v10  ;;  %2194 = vmatprep.subr.mxu0 %v2542_v6  ;;  %p2513_p10 = scmp.ne.s32.totalorder %s1988_s3, %s2512_s13  ;;  %p2518_p12 = scmp.lt.s32.totalorder %s2512_s13, %s2512_s13 }
  0x25   :  { %2148 = vmatmul.mubr.msk.f32.gmra.mxu0 %vm88_vm0, %v67_v11 }
  0x26   :  { %2150 = vmatprep.mubr.msk.f32.mxu0 %vm88_vm0, %v68_v12  ;;  %p2519_p13 = por %p2518_p12, %p2517_p11 }
  0x27   :  { %2163 = vmatmul.mubr.msk.f32.gmra.mxu1 %vm88_vm0, %v77_v13 }
  0x28   :  { %2165 = vmatprep.mubr.msk.f32.mxu1 %vm88_vm0, %v78_v14  ;;  %p2520_p0 = pnand %p2519_p13, %p2513_p10 }
  0x29   :  { %2151 = vmatmul.mubr.msk.f32.gmra.mxu0 %vm88_vm0, %v69_v15 }
  0x2a   :  { %2153 = vmatprep.mubr.msk.f32.mxu0 %vm88_vm0, %v70_v16 }
  0x2b   :  { %2166 = vmatmul.mubr.msk.f32.gmra.mxu1 %vm88_vm0, %v79_v17 }
  0x2c   :  { %2170 = vmatprep.mubr.msk.f32.mxu1 %vm2543_vm1, %v2542_v6 }
  0x2d   :  { %2154 = vmatmul.mubr.msk.f32.gmra.mxu0 %vm88_vm0, %v71_v18 }
  0x2e   :  { %2198 = vmatprep.mubr.msk.f32.mxu0 %vm2543_vm1, %v2542_v6 }
  0x2f   :  { %2171 = vmatmul.mubr.msk.f32.vlgmr.msra.gmra.mxu1 %vm88_vm0, %v298_v19 }
  0x30   :  { %2177 = vmatprep.mubr.msk.f32.mxu1 %vm2543_vm1, %v2542_v6 }
  0xdf   :  { %v2158_v20 = vpop.f32.mrf.mxu1 }
  0xe0   :  { %v249_v62 = vadd.f32 %v2158_v20, %v2693_v21 }
  0xe1   :  { %v2146_v22 = vpop.f32.mrf.mxu0  ;;  %v2695_v23 = vpop.f32.mrf.mxu1 }
  0xe2   :  { %v209_v24 = vadd.f32 %v2146_v22, %v2693_v21  ;;  %v244_v9 = vadd.f32 %v2693_v21, %v2695_v23 }
  0xe3   :  { %v203_v25 = vpop.f32.mrf.mxu0  ;;  %v2161_v26 = vpop.f32.mrf.mxu1 }
  0xe4   :  { %2400 = vtanh.f32 %v209_v24  ;;  %v204_v27 = vadd.f32 %v2693_v21, %v203_v25  ;;  %v259_v49 = vadd.f32 %v2161_v26, %v2693_v21 }
  0xe5   :  { %v2149_v28 = vpop.f32.mrf.mxu0  ;;  %v253_v29 = vpop.f32.mrf.mxu1 }
  0xe6   :  { %2402 = vtanh.f32 %v204_v27  ;;  %v219_v43 = vadd.f32 %v2149_v28, %v2693_v21  ;;  %v254_v53 = vadd.f32 %v2693_v21, %v253_v29  ;;  %v432_v28 = vld [vmem:[%s3014_s2] sm:$0x1] }
  0xe7   :  { %v213_v30 = vpop.f32.mrf.mxu0  ;;  %v2699_v31 = vpop.f32.mrf.mxu1 }
  0xe8   :  { %v214_v50 = vadd.f32 %v2693_v21, %v213_v30  ;;  %v269_v13 = vadd.f32 %v2699_v31, %v2693_v21 }
  0xe9   :  { %v2152_v32 = vpop.f32.mrf.mxu0  ;;  %v2701_v33 = vpop.f32.mrf.mxu1 }
  0xea   :  { %v229_v54 = vadd.f32 %v2152_v32, %v2693_v21  ;;  %v264_v17 = vadd.f32 %v2693_v21, %v2701_v33 }
  0xeb   :  { %v223_v34 = vpop.f32.mrf.mxu0  ;;  %v2167_v35 = vpop.f32.mrf.mxu1 }
  0xec   :  { %v224_v57 = vadd.f32 %v2693_v21, %v223_v34  ;;  %v279_v59 = vadd.f32 %v2167_v35, %v2693_v21  ;;  %v433_v35 = vld [vmem:[%s3014_s2 + $0x1] sm:$0x1] }
  0xed   :  { %v2155_v36 = vpop.f32.mrf.mxu0  ;;  %v273_v37 = vpop.f32.mrf.mxu1 }
  0xee   :  { %v239_v38 = vadd.f32 %v2155_v36, %v2693_v21  ;;  %v274_v3 = vadd.f32 %v2693_v21, %v273_v37 }
  0xef   :  { %v369_v39 = vpop.f32.mrf.mxu1  ;;  %v233_v40 = vpop.f32.mrf.mxu0 }
  0xf0   :  { %2404 = vtanh.f32 %v239_v38  ;;  %v234_v41 = vadd.f32 %v2693_v21, %v233_v40 }
  0xf1   :  { %v2705_v42 = vpop.eup %2400  ;;  %v2172_v44 = vpop.f32.mrf.mxu1  ;;  %2406 = vtanh.f32 %v369_v39 }
  0xf2   :  { %2174 = vmatpush3.xpose.msra.mxu1 %v2705_v42  ;;  %2408 = vtanh.f32 %v234_v41 }
  0xf3   :  { %v2709_v45 = vpop.eup %2402  ;;  %2175 = vmatprep.subr.mxu1 %v2542_v6  ;;  %2410 = vtanh.f32 %v219_v43  ;;  %v435_v43 = vld [vmem:[%s3014_s2 + $0x3] sm:$0x1] }
  0xf4   :  { %2412 = vtanh.f32 %v259_v49  ;;  %v437_v49 = vld [vmem:[%s3014_s2 + $0x5] sm:$0x1] }
  0xf5   :  { %2414 = vtanh.f32 %v214_v50 }
  0xf6   :  { %2176 = vmatpush3.xpose.msra.mxu1 %v2709_v45  ;;  %2416 = vtanh.f32 %v254_v53 }
  0xf7   :  { %2180 = vmatprep.subr.mxu1 %v2542_v6  ;;  %2418 = vtanh.f32 %v229_v54 }
  0xf8   :  { %2420 = vtanh.f32 %v224_v57 }
  0xf9   :  { %2422 = vtanh.f32 %v279_v59 }
  0xfa   :  { %2424 = vtanh.f32 %v249_v62 }
  0xfb   :  { %2426 = vtanh.f32 %v274_v3 }
  0xfc   :  { %2428 = vtanh.f32 %v244_v9 }
  0xfd   :  { %v2720_v56 = vpop.eup %2404  ;;  %2430 = vtanh.f32 %v269_v13 }
  0xfe   :  { %2195 = vmatpush3.xpose.msra.mxu0 %v2720_v56  ;;  %v2724_v58 = vpop.eup %2406  ;;  %2432 = vtanh.f32 %v264_v17 }
  0xff   :  { %2196 = vmatprep.subr.mxu0 %v2542_v6  ;;  %v2728_v60 = vpop.eup %2408  ;;  %v382_v61 = vrot.slane %v2724_v58, %v2718_v55  ;;  %v375_v2 = vcombine.high %v2724_v58, %v2724_v58 }
 0x100   :  { %v2733_v63 = vpop.eup %2410 }
 0x101   :  { %v390_v0 = vcombine.high %v382_v61, %v382_v61  ;;  %v398_v1 = vrot.slane %v382_v61, %v2718_v55  ;;  %v389_v7 = vrot.slane %v375_v2, %v2718_v55  ;;  %v2747_v8 = vpop.eup %2412  ;;  %v438_v2 = vld [vmem:[%s3014_s2 + $0x6] sm:$0x1] }
 0x102   :  { %2197 = vmatpush3.xpose.msra.mxu0 %v2728_v60  ;;  %v2751_v10 = vpop.eup %2414 }
 0x103   :  { %2208 = vmatprep.subr.mxu0 %v2542_v6  ;;  %v412_v4 = vrot.slane %v390_v0, %v2718_v55  ;;  %2178 = vmatmul.mubr.f32.vlgmr.msra.gmra.mxu1 %v398_v1  ;;  %v391_v11 = vcombine.high %v389_v7, %v389_v7  ;;  %v2757_v12 = vpop.eup %2416  ;;  %v420_v19 = vcombine.high %v398_v1, %v398_v1 }
 0x104   :  { %2181 = vmatpush3.xpose.msra.mxu1 %v2733_v63  ;;  %2184 = vmatprep.mubr.msk.f32.mxu1 %vm2543_vm1, %v2542_v6  ;;  %v2419_v14 = vpop.eup %2418  ;;  %v405_v24 = vrot.slane %v389_v7, %v2718_v55 }
 0x105   :  { %2182 = vmatprep.subr.mxu1 %v2542_v6  ;;  %v422_v5 = vcombine.high %v412_v4, %v412_v4  ;;  %v419_v15 = vrot.slane %v391_v11, %v2718_v55  ;;  %v2421_v16 = vpop.eup %2420  ;;  %v439_v55 = vld [vmem:[%s3014_s2 + $0x7] sm:$0x1] }
 0x106   :  { %v2771_v18 = vpop.eup %2422  ;;  %v421_v27 = vcombine.high %v405_v24, %v405_v24 }
 0x107   :  { %2199 = vmatmul.mubr.f32.vlgmr.msra.gmra.mxu0 %v422_v5  ;;  %v2776_v20 = vpop.eup %2424  ;;  %v423_v22 = vcombine.high %v419_v15, %v419_v15 }
 0x108   :  { %2183 = vmatpush3.xpose.msra.mxu1 %v2751_v10  ;;  %2209 = vmatpush3.xpose.msra.mxu0 %v2747_v8  ;;  %v2780_v21 = vpop.eup %2426 }
 0x109   :  { %2187 = vmatprep.subr.mxu1 %v2542_v6  ;;  %2210 = vmatprep.subr.mxu0 %v2542_v6  ;;  %v2788_v23 = vpop.eup %2428 }
 0x10a   :  { %2212 = vmatprep.mubr.msk.f32.mxu0 %vm2543_vm1, %v2542_v6  ;;  %v2796_v25 = vpop.eup %2430 }
 0x10b   :  { %2185 = vmatmul.mubr.f32.vlgmr.msra.gmra.mxu1 %v412_v4  ;;  %v2803_v26 = vpop.eup %2432 }
 0x10c   :  { %2188 = vmatpush3.xpose.msra.mxu1 %v2419_v14  ;;  %2211 = vmatpush3.xpose.msra.mxu0 %v2757_v12 }
 0x10d   :  { %2189 = vmatprep.subr.mxu1 %v2542_v6  ;;  %2222 = vmatprep.subr.mxu0 %v2542_v6 }
 0x10e   :  { %2191 = vmatprep.mubr.msk.f32.mxu1 %vm2543_vm1, %v2542_v6 }
 0x10f   :  { %2213 = vmatmul.mubr.f32.vlgmr.msra.gmra.mxu0 %v419_v15 }
 0x110   :  { %2190 = vmatpush3.xpose.msra.mxu1 %v2421_v16  ;;  %2223 = vmatpush3.xpose.msra.mxu0 %v2771_v18 }
 0x111   :  { %2201 = vmatprep.subr.mxu1 %v2542_v6  ;;  %2224 = vmatprep.subr.mxu0 %v2542_v6 }
 0x112   :  { %2226 = vmatprep.mubr.msk.f32.mxu0 %vm2543_vm1, %v2542_v6 }
 0x113   :  { %2192 = vmatmul.mubr.f32.vlgmr.msra.gmra.mxu1 %v420_v19 }
 0x114   :  { %2202 = vmatpush3.xpose.msra.mxu1 %v2776_v20  ;;  %2225 = vmatpush3.xpose.msra.mxu0 %v2780_v21 }
 0x115   :  { %2203 = vmatprep.subr.mxu1 %v2542_v6  ;;  %2243 = vmatprep.subr.mxu0 %v2542_v6 }
 0x116   :  { %2205 = vmatprep.mubr.msk.f32.mxu1 %vm2543_vm1, %v2542_v6 }
 0x117   :  { %2227 = vmatmul.mubr.f32.vlgmr.msra.gmra.mxu0 %v423_v22 }
 0x118   :  { %2204 = vmatpush3.xpose.msra.mxu1 %v2788_v23  ;;  %2244 = vmatpush3.msra.mxu0 %v2419_v14 }
 0x119   :  { %2245 = vmatprep.subr.mxu0 %v2542_v6  ;;  %2215 = vmatprep.subr.mxu1 %v2542_v6 }
 0x11a   :  { %2246 = vmatpush3.msra.mxu0 %v2421_v16  ;;  %2247 = vmatprep.mubr.msk.f32.mxu0 %vm2543_vm1, %v2542_v6 }
 0x11b   :  { %2206 = vmatmul.mubr.f32.vlgmr.msra.gmra.mxu1 %v405_v24  ;;  %2257 = vmatprep.subr.mxu0 %v2542_v6 }
 0x11c   :  { %2216 = vmatpush3.xpose.msra.mxu1 %v2796_v25  ;;  %2219 = vmatprep.mubr.msk.f32.mxu1 %vm2543_vm1, %v2542_v6 }
 0x11d   :  { %2217 = vmatprep.subr.mxu1 %v2542_v6 }
 0x120   :  { %2218 = vmatpush3.xpose.msra.mxu1 %v2803_v26 }
 0x121   :  { %2229 = vmatprep.subr.mxu1 %v2542_v6 }
 0x123   :  { %2220 = vmatmul.mubr.f32.vlgmr.msra.gmra.mxu1 %v421_v27 }
 0x124   :  { %2230 = vmatpush3.msra.mxu1 %v2705_v42  ;;  %2233 = vmatprep.mubr.msk.f32.mxu1 %vm2543_vm1, %v2542_v6  ;;  %v434_v42 = vld [vmem:[%s3014_s2 + $0x2] sm:$0x1] }
 0x125   :  { %2231 = vmatprep.subr.mxu1 %v2542_v6 }
 0x126   :  { %2232 = vmatpush3.msra.mxu1 %v2709_v45 }
 0x127   :  { %2236 = vmatprep.subr.mxu1 %v2542_v6 }
 0x1c3   :  { %v506_v29 = vpop.f32.mrf.mxu1 }
 0x1c4   :  { %v507_v30 = vadd.f32 %v506_v29, %v432_v28 }
 0x1c5   :  { %v2179_v31 = vpop.f32.mrf.mxu1 }
 0x1c6   :  { %v1001_v32 = vsel %vm1000_vm2, %v507_v30, -inf }
 0x1c7   :  { %v716_v33 = vpop.f32.mrf.mxu0  ;;  %1002 = vmax.xlane.f32.xlu0 %v1001_v32 }
 0x1c8   :  { %v717_v47 = vadd.f32 %v716_v33, %v435_v43 }
 0x1c9   :  { %v2200_v34 = vpop.f32.mrf.mxu0 }
 0x1ca   :  { %v1010_v54 = vsel %vm1000_vm2, %v717_v47, -inf }
 0x1cb   :  { %v576_v36 = vpop.f32.mrf.mxu1 }
 0x1cc   :  { %v577_v37 = vadd.f32 %v576_v36, %v433_v35 }
 0x1cd   :  { %v2186_v38 = vpop.f32.mrf.mxu1 }
 0x1ce   :  { %v1004_v39 = vsel %vm1000_vm2, %v577_v37, -inf }
 0x1cf   :  { %v856_v40 = vpop.f32.mrf.mxu0  ;;  %1005 = vmax.xlane.f32.xlu0 %v1004_v39 }
 0x1d0   :  { %v857_v53 = vadd.f32 %v856_v40, %v437_v49 }
 0x1d1   :  { %v2214_v41 = vpop.f32.mrf.mxu0 }
 0x1d2   :  { %v1016_v0 = vsel %vm1000_vm2, %v857_v53, -inf }
 0x1d3   :  { %v646_v44 = vpop.f32.mrf.mxu1 }
 0x1d4   :  { %v647_v45 = vadd.f32 %v646_v44, %v434_v42 }
 0x1d5   :  { %v2193_v46 = vpop.f32.mrf.mxu1 }
 0x1d6   :  { %v1007_v48 = vsel %vm1000_vm2, %v647_v45, -inf }
 0x1d7   :  { %v996_v50 = vpop.f32.mrf.mxu0  ;;  %1008 = vmax.xlane.f32.xlu1 %v1007_v48 }
 0x1d8   :  { %v997_v62 = vadd.f32 %v996_v50, %v439_v55 }
 0x1d9   :  { %v2228_v51 = vpop.f32.mrf.mxu0 }
 0x1da   :  { %v1022_v3 = vsel %vm1000_vm2, %v997_v62, -inf }
 0x1db   :  { %1011 = vmax.xlane.f32.xlu1 %v1010_v54  ;;  %v786_v57 = vpop.f32.mrf.mxu1 }
 0x1dc   :  { %v787_v59 = vadd.f32 %v786_v57, %v436_v52 }
 0x1dd   :  { %v2207_v61 = vpop.f32.mrf.mxu1 }
 0x1de   :  { %v1013_v1 = vsel %vm1000_vm2, %v787_v59, -inf }
 0x1df   :  { %1017 = vmax.xlane.f32.xlu1 %v1016_v0  ;;  %1014 = vmax.xlane.f32.xlu0 %v1013_v1 }
 0x1e3   :  { %1023 = vmax.xlane.f32.xlu1 %v1022_v3  ;;  %v926_v4 = vpop.f32.mrf.mxu1 }
 0x1e4   :  { %v927_v5 = vadd.f32 %v926_v4, %v438_v2 }
 0x1e5   :  { %v2221_v7 = vpop.f32.mrf.mxu1 }
 0x1e6   :  { %v1019_v9 = vsel %vm1000_vm2, %v927_v5, -inf }
 0x1e7   :  { %1020 = vmax.xlane.f32.xlu0 %v1019_v9 }
 0x250   :  { %v1003_v11 = vpop.xlane.xlu0 %1002 }
 0x251   :  { %v1025_v13 = vsub.f32 %v507_v30, %v1003_v11 }
 0x253   :  { %v1033_v14 = vmul.f32 1.442695, %v1025_v13 }
 0x255   :  { %2434 = vpow2.f32 %v1033_v14 }
 0x258   :  { %v1006_v15 = vpop.xlane.xlu0 %1005 }
 0x259   :  { %v1026_v16 = vsub.f32 %v577_v37, %v1006_v15 }
 0x25b   :  { %v1035_v17 = vmul.f32 1.442695, %v1026_v16 }
 0x25d   :  { %2436 = vpow2.f32 %v1035_v17  ;;  %v1686_v17 = vld [vmem:[%s3018_s6 + $0x60] sm:$0xff] }
 0x260   :  { %v1009_v19 = vpop.xlane.xlu1 %1008 }
 0x261   :  { %v1027_v22 = vsub.f32 %v647_v45, %v1009_v19  ;;  %v1685_v19 = vld [vmem:[%s3018_s6 + $0x58] sm:$0xff] }
 0x262   :  { %v2435_v24 = vpop.eup %2434 }
 0x263   :  { %v1037_v27 = vmul.f32 1.442695, %v1027_v22  ;;  %v1049_v28 = vsel %vm1000_vm2, %v2435_v24, 0.0  ;;  %v1684_v22 = vld [vmem:[%s3018_s6 + $0x50] sm:$0xff] }
 0x264   :  { %v1012_v29 = vpop.xlane.xlu1 %1011  ;;  %1050 = vadd.xlane.f32.xlu0 %v1049_v28  ;;  %v1681_v28 = vld [vmem:[%s3018_s6 + $0x38] sm:$0xff] }
 0x265   :  { %2438 = vpow2.f32 %v1037_v27  ;;  %v1028_v31 = vsub.f32 %v717_v47, %v1012_v29  ;;  %v1682_v27 = vld [vmem:[%s3018_s6 + $0x40] sm:$0xff]  ;;  %v1680_v29 = vld [vmem:[%s3018_s6 + $0x30] sm:$0xff] }
 0x267   :  { %v1039_v32 = vmul.f32 1.442695, %v1028_v31  ;;  %v1679_v31 = vld [vmem:[%s3018_s6 + $0x28] sm:$0xff] }
 0x268   :  { %v1018_v33 = vpop.xlane.xlu1 %1017  ;;  %v1015_v34 = vpop.xlane.xlu0 %1014 }
 0x269   :  { %2440 = vpow2.f32 %v1039_v32  ;;  %v1030_v30 = vsub.f32 %v857_v53, %v1018_v33  ;;  %v1029_v35 = vsub.f32 %v787_v59, %v1015_v34  ;;  %v1678_v32 = vld [vmem:[%s3018_s6 + $0x20] sm:$0xff]  ;;  %v1677_v33 = vld [vmem:[%s3018_s6 + $0x18] sm:$0xff]  ;;  %v1676_v34 = vld [vmem:[%s3018_s6 + $0x10] sm:$0xff] }
 0x26a   :  { %v2437_v36 = vpop.eup %2436 }
 0x26b   :  { %v1043_v37 = vmul.f32 1.442695, %v1030_v30  ;;  %v1041_v38 = vmul.f32 1.442695, %v1029_v35  ;;  %v1052_v39 = vsel %vm1000_vm2, %v2437_v36, 0.0  ;;  %v1675_v30 = vld [vmem:[%s3018_s6 + $0x8] sm:$0xff] }
 0x26c   :  { %1053 = vadd.xlane.f32.xlu1 %v1052_v39  ;;  %v1024_v40 = vpop.xlane.xlu1 %1023  ;;  %v1674_v35 = vld [vmem:[%s3018_s6] sm:$0xff] }
 0x26d   :  { %2442 = vpow2.f32 %v1043_v37  ;;  %v1032_v41 = vsub.f32 %v997_v62, %v1024_v40  ;;  %v1704_v37 = vld [vmem:[#allocation2 + $0x70] sm:$0xff]  ;;  %v1702_v39 = vld [vmem:[#allocation2 + $0x60] sm:$0xff]  ;;  %v1701_v40 = vld [vmem:[#allocation2 + $0x58] sm:$0xff] }
 0x26e   :  { %2444 = vpow2.f32 %v1041_v38  ;;  %v1703_v38 = vld [vmem:[#allocation2 + $0x68] sm:$0xff] }
 0x26f   :  { %v1047_v42 = vmul.f32 1.442695, %v1032_v41  ;;  %v1699_v41 = vld [vmem:[#allocation2 + $0x48] sm:$0xff] }
 0x270   :  { %v1021_v43 = vpop.xlane.xlu0 %1020 }
 0x271   :  { %2446 = vpow2.f32 %v1047_v42  ;;  %v1031_v44 = vsub.f32 %v927_v5, %v1021_v43  ;;  %v1698_v42 = vld [vmem:[#allocation2 + $0x40] sm:$0xff]  ;;  %v1697_v43 = vld [vmem:[#allocation2 + $0x38] sm:$0xff] }
 0x272   :  { %v2439_v45 = vpop.eup %2438 }
 0x273   :  { %v1045_v46 = vmul.f32 1.442695, %v1031_v44  ;;  %v1055_v47 = vsel %vm1000_vm2, %v2439_v45, 0.0  ;;  %v1696_v44 = vld [vmem:[#allocation2 + $0x30] sm:$0xff] }
 0x274   :  { %1056 = vadd.xlane.f32.xlu0 %v1055_v47  ;;  %v1693_v47 = vld [vmem:[#allocation2 + $0x18] sm:$0xff] }
 0x275   :  { %2448 = vpow2.f32 %v1045_v46  ;;  %v1694_v46 = vld [vmem:[#allocation2 + $0x20] sm:$0xff] }
 0x276   :  { %v2441_v48 = vpop.eup %2440 }
 0x277   :  { %v1058_v49 = vsel %vm1000_vm2, %v2441_v48, 0.0 }
 0x278   :  { %1059 = vadd.xlane.f32.xlu1 %v1058_v49  ;;  %v1691_v49 = vld [vmem:[#allocation2 + $0x8] sm:$0xff] }
 0x27a   :  { %v2443_v50 = vpop.eup %2442 }
 0x27b   :  { %v2445_v51 = vpop.eup %2444  ;;  %v1064_v52 = vsel %vm1000_vm2, %v2443_v50, 0.0 }
 0x27c   :  { %1065 = vadd.xlane.f32.xlu1 %v1064_v52  ;;  %v1061_v53 = vsel %vm1000_vm2, %v2445_v51, 0.0 }
 0x27d   :  { %1062 = vadd.xlane.f32.xlu0 %v1061_v53 }
 0x27e   :  { %v2851_v54 = vpop.eup %2446 }
 0x27f   :  { %v1070_v55 = vsel %vm1000_vm2, %v2851_v54, 0.0 }
 0x280   :  { %1071 = vadd.xlane.f32.xlu1 %v1070_v55 }
 0x282   :  { %v2855_v57 = vpop.eup %2448 }
 0x283   :  { %v1067_v59 = vsel %vm1000_vm2, %v2855_v57, 0.0 }
 0x284   :  { %1068 = vadd.xlane.f32.xlu0 %v1067_v59 }
 0x2ed   :  { %v1051_v61 = vpop.xlane.xlu0 %1050 }
 0x2ee   :  { %2450 = vrcp.f32 %v1051_v61 }
 0x2f5   :  { %v1054_v62 = vpop.xlane.xlu1 %1053 }
 0x2f6   :  { %2452 = vrcp.f32 %v1054_v62 }
 0x2fb   :  { %v2451_v0 = vpop.eup %2450 }
 0x2fc   :  { %v1081_v1 = vmul.f32 %v2451_v0, %v2435_v24  ;;  %v1683_v24 = vld [vmem:[%s3018_s6 + $0x48] sm:$0xff] }
 0x2fd   :  { %v1057_v2 = vpop.xlane.xlu0 %1056 }
 0x2fe   :  { %2454 = vrcp.f32 %v1057_v2  ;;  %2234 = vmatmul.mubr.msk.f32.vlgmr.msra.gmra.mxu1 %vm1089_vm3, %v1081_v1 }
 0x2ff   :  { %2237 = vmatpush3.msra.mxu1 %v2733_v63  ;;  %2240 = vmatprep.mubr.msk.f32.mxu1 %vm2543_vm1, %v2542_v6 }
 0x300   :  { %2238 = vmatprep.subr.mxu1 %v2542_v6 }
 0x301   :  { %v1060_v3 = vpop.xlane.xlu1 %1059  ;;  %2239 = vmatpush3.msra.mxu1 %v2751_v10 }
 0x302   :  { %2456 = vrcp.f32 %v1060_v3  ;;  %2250 = vmatprep.subr.mxu1 %v2542_v6 }
 0x303   :  { %v2453_v4 = vpop.eup %2452 }
 0x304   :  { %v1082_v5 = vmul.f32 %v2453_v4, %v2437_v36  ;;  %v1705_v36 = vld [vmem:[#allocation2 + $0x78] sm:$0xff] }
 0x305   :  { %v1066_v7 = vpop.xlane.xlu1 %1065 }
 0x306   :  { %2458 = vrcp.f32 %v1066_v7  ;;  %v1063_v9 = vpop.xlane.xlu0 %1062  ;;  %2241 = vmatmul.mubr.msk.f32.vlgmr.msra.gmra.mxu1 %vm1089_vm3, %v1082_v5 }
 0x307   :  { %2460 = vrcp.f32 %v1063_v9  ;;  %2251 = vmatpush3.msra.mxu1 %v2720_v56  ;;  %2254 = vmatprep.mubr.msk.f32.mxu1 %vm2543_vm1, %v2542_v6 }
 0x308   :  { %2252 = vmatprep.subr.mxu1 %v2542_v6 }
 0x309   :  { %2253 = vmatpush3.msra.mxu1 %v2728_v60  ;;  %v1072_v63 = vpop.xlane.xlu1 %1071 }
 0x30a   :  { %2462 = vrcp.f32 %v1072_v63  ;;  %2264 = vmatprep.subr.mxu1 %v2542_v6 }
 0x30b   :  { %v2455_v10 = vpop.eup %2454 }
 0x30c   :  { %v1083_v11 = vmul.f32 %v2455_v10, %v2439_v45  ;;  %v1695_v45 = vld [vmem:[#allocation2 + $0x28] sm:$0xff] }
 0x30d   :  { %v1069_v13 = vpop.xlane.xlu0 %1068 }
 0x30e   :  { %2464 = vrcp.f32 %v1069_v13  ;;  %2248 = vmatmul.mubr.msk.f32.vlgmr.msra.gmra.mxu0 %vm1089_vm3, %v1083_v11 }
 0x30f   :  { %v2457_v14 = vpop.eup %2456  ;;  %2258 = vmatpush3.msra.mxu0 %v2776_v20  ;;  %2261 = vmatprep.mubr.msk.f32.mxu0 %vm2543_vm1, %v2542_v6 }
 0x310   :  { %2259 = vmatprep.subr.mxu0 %v2542_v6  ;;  %v1084_v56 = vmul.f32 %v2457_v14, %v2441_v48  ;;  %v1692_v48 = vld [vmem:[#allocation2 + $0x10] sm:$0xff] }
 0x311   :  { %2260 = vmatpush3.msra.mxu0 %v2788_v23 }
 0x312   :  { %2255 = vmatmul.mubr.msk.f32.vlgmr.msra.gmra.mxu1 %vm1089_vm3, %v1084_v56  ;;  %2271 = vmatprep.subr.mxu0 %v2542_v6 }
 0x313   :  { %v2459_v60 = vpop.eup %2458  ;;  %2265 = vmatpush3.msra.mxu1 %v2747_v8  ;;  %2268 = vmatprep.mubr.msk.f32.mxu1 %vm2543_vm1, %v2542_v6 }
 0x314   :  { %v2461_v15 = vpop.eup %2460  ;;  %2266 = vmatprep.subr.mxu1 %v2542_v6  ;;  %v1086_v20 = vmul.f32 %v2459_v60, %v2443_v50  ;;  %v1690_v50 = vld [vmem:[#allocation2] sm:$0xff] }
 0x315   :  { %2267 = vmatpush3.msra.mxu1 %v2757_v12  ;;  %v1085_v16 = vmul.f32 %v2461_v15, %v2445_v51  ;;  %v1689_v12 = vld [vmem:[%s3018_s6 + $0x78] sm:$0xff] }
 0x316   :  { %2278 = vmatprep.subr.mxu1 %v2542_v6  ;;  %2269 = vmatmul.mubr.msk.f32.vlgmr.msra.gmra.mxu1 %vm1089_vm3, %v1086_v20 }
 0x317   :  { %v2463_v23 = vpop.eup %2462  ;;  %2262 = vmatmul.mubr.msk.f32.vlgmr.msra.gmra.mxu0 %vm1089_vm3, %v1085_v16  ;;  %2279 = vmatpush3.msra.mxu1 %v2771_v18 }
 0x318   :  { %2272 = vmatpush3.msra.mxu0 %v2796_v25  ;;  %2280 = vmatprep.subr.mxu1 %v2542_v6  ;;  %v1088_v8 = vmul.f32 %v2463_v23, %v2851_v54  ;;  %v1688_v25 = vld [vmem:[%s3018_s6 + $0x70] sm:$0xff] }
 0x319   :  { %2273 = vmatprep.subr.mxu0 %v2542_v6  ;;  %2281 = vmatpush3.msra.mxu1 %v2780_v21 }
 0x31a   :  { %2274 = vmatpush3.msra.mxu0 %v2803_v26  ;;  %2282 = vmatprep.mubr.msk.f32.mxu1 %vm2543_vm1, %v2542_v6  ;;  %v1687_v26 = vld [vmem:[%s3018_s6 + $0x68] sm:$0xff] }
 0x31b   :  { %v2465_v18 = vpop.eup %2464  ;;  %2320 = vmatprep.subr.mxu1 %v2542_v6  ;;  %2283 = vmatmul.mubr.msk.f32.vlgmr.msra.gmra.mxu1 %vm1089_vm3, %v1088_v8 }
 0x31c   :  { %2321 = vmatpush3.msra.mxu1 %v1689_v12  ;;  %2275 = vmatprep.mubr.msk.f32.mxu0 %vm2543_vm1, %v2542_v6  ;;  %v1087_v21 = vmul.f32 %v2465_v18, %v2855_v57  ;;  %v1892_v12 = vld [vmem:[#allocation5 + $0x78] sm:$0xff] }
 0x31d   :  { %2322 = vmatprep.subr.mxu1 %v2542_v6  ;;  %2352 = vmatprep.mubr.msk.f32.mxu1 %vm2543_vm1, %v2542_v6 }
 0x31e   :  { %2323 = vmatpush3.msra.mxu1 %v1688_v25  ;;  %2276 = vmatmul.mubr.msk.f32.vlgmr.msra.gmra.mxu0 %vm1089_vm3, %v1087_v21  ;;  %v1891_v25 = vld [vmem:[#allocation5 + $0x70] sm:$0xff]  ;;  %v1890_v21 = vld [vmem:[#allocation5 + $0x68] sm:$0xff] }
 0x31f   :  { %2324 = vmatprep.subr.mxu1 %v2542_v6  ;;  %2285 = vmatprep.subr.mxu0 %v2542_v6 }
 0x320   :  { %2325 = vmatpush3.msra.mxu1 %v1687_v26  ;;  %2317 = vmatprep.mubr.msk.f32.mxu0 %vm2543_vm1, %v2542_v6  ;;  %v1889_v26 = vld [vmem:[#allocation5 + $0x60] sm:$0xff] }
 0x321   :  { %2326 = vmatprep.subr.mxu1 %v2542_v6  ;;  %2286 = vmatpush3.msra.mxu0 %v1705_v36  ;;  %v1877_v36 = vld [vmem:[#allocation5] sm:$0xff] }
 0x322   :  { %2327 = vmatpush3.msra.mxu1 %v1686_v17  ;;  %2287 = vmatprep.subr.mxu0 %v2542_v6  ;;  %v1888_v17 = vld [vmem:[#allocation5 + $0x58] sm:$0xff] }
 0x323   :  { %2328 = vmatprep.subr.mxu1 %v2542_v6  ;;  %2288 = vmatpush3.msra.mxu0 %v1704_v37 }
 0x324   :  { %2329 = vmatpush3.msra.mxu1 %v1685_v19  ;;  %2289 = vmatprep.subr.mxu0 %v2542_v6  ;;  %v1887_v19 = vld [vmem:[#allocation5 + $0x50] sm:$0xff] }
 0x325   :  { %2330 = vmatprep.subr.mxu1 %v2542_v6  ;;  %2290 = vmatpush3.msra.mxu0 %v1703_v38 }
 0x326   :  { %2331 = vmatpush3.msra.mxu1 %v1684_v22  ;;  %2291 = vmatprep.subr.mxu0 %v2542_v6  ;;  %v1886_v22 = vld [vmem:[#allocation5 + $0x48] sm:$0xff] }
 0x327   :  { %2332 = vmatprep.subr.mxu1 %v2542_v6  ;;  %2292 = vmatpush3.msra.mxu0 %v1702_v39 }
 0x328   :  { %2333 = vmatpush3.msra.mxu1 %v1683_v24  ;;  %2293 = vmatprep.subr.mxu0 %v2542_v6 }
 0x329   :  { %2334 = vmatprep.subr.mxu1 %v2542_v6  ;;  %2294 = vmatpush3.msra.mxu0 %v1701_v40 }
 0x32a   :  { %2335 = vmatpush3.msra.mxu1 %v1682_v27  ;;  %2295 = vmatprep.subr.mxu0 %v2542_v6 }
 0x32b   :  { %2336 = vmatprep.subr.mxu1 %v2542_v6 }
 0x32c   :  { %2337 = vmatpush3.msra.mxu1 %v1681_v28  ;;  %v1885_v28 = vld [vmem:[#allocation5 + $0x40] sm:$0xff] }
 0x32d   :  { %2338 = vmatprep.subr.mxu1 %v2542_v6 }
 0x32e   :  { %2339 = vmatpush3.msra.mxu1 %v1680_v29  ;;  %v1884_v29 = vld [vmem:[#allocation5 + $0x38] sm:$0xff] }
 0x32f   :  { %2340 = vmatprep.subr.mxu1 %v2542_v6 }
 0x330   :  { %2341 = vmatpush3.msra.mxu1 %v1679_v31  ;;  %v1883_v31 = vld [vmem:[#allocation5 + $0x30] sm:$0xff] }
 0x331   :  { %2342 = vmatprep.subr.mxu1 %v2542_v6 }
 0x332   :  { %2343 = vmatpush3.msra.mxu1 %v1678_v32  ;;  %v1882_v32 = vld [vmem:[#allocation5 + $0x28] sm:$0xff] }
 0x333   :  { %2344 = vmatprep.subr.mxu1 %v2542_v6 }
 0x334   :  { %2345 = vmatpush3.msra.mxu1 %v1677_v33  ;;  %v1881_v33 = vld [vmem:[#allocation5 + $0x20] sm:$0xff] }
 0x335   :  { %2346 = vmatprep.subr.mxu1 %v2542_v6 }
 0x336   :  { %2347 = vmatpush3.msra.mxu1 %v1676_v34  ;;  %v1880_v34 = vld [vmem:[#allocation5 + $0x18] sm:$0xff] }
 0x337   :  { %2348 = vmatprep.subr.mxu1 %v2542_v6 }
 0x338   :  { %2349 = vmatpush3.msra.mxu1 %v1675_v30  ;;  %v1879_v30 = vld [vmem:[#allocation5 + $0x10] sm:$0xff] }
 0x339   :  { %2350 = vmatprep.subr.mxu1 %v2542_v6 }
 0x33a   :  { %2351 = vmatpush3.msra.mxu1 %v1674_v35  ;;  %v1878_v35 = vld [vmem:[#allocation5 + $0x8] sm:$0xff] }
 0x33b   :  { %2353 = vmatmul.mubr.f32.vlgmr.msra.gmra.mxu1 %v2724_v58  ;;  %v1700_v58 = vld [vmem:[#allocation2 + $0x50] sm:$0xff] }
 0x33c   :  { %2296 = vmatpush3.msra.mxu0 %v1700_v58  ;;  %v2023_v58 = vld [vmem:[%s3021_s9] ss:$0 sm:$0xff] }
 0x33d   :  { %2297 = vmatprep.subr.mxu0 %v2542_v6 }
 0x33e   :  { %2298 = vmatpush3.msra.mxu0 %v1699_v41 }
 0x33f   :  { %2299 = vmatprep.subr.mxu0 %v2542_v6 }
 0x340   :  { %2300 = vmatpush3.msra.mxu0 %v1698_v42 }
 0x341   :  { %2301 = vmatprep.subr.mxu0 %v2542_v6 }
 0x342   :  { %2302 = vmatpush3.msra.mxu0 %v1697_v43 }
 0x343   :  { %2303 = vmatprep.subr.mxu0 %v2542_v6 }
 0x344   :  { %2304 = vmatpush3.msra.mxu0 %v1696_v44 }
 0x345   :  { %2305 = vmatprep.subr.mxu0 %v2542_v6 }
 0x346   :  { %2306 = vmatpush3.msra.mxu0 %v1695_v45 }
 0x347   :  { %2307 = vmatprep.subr.mxu0 %v2542_v6 }
 0x348   :  { %2308 = vmatpush3.msra.mxu0 %v1694_v46 }
 0x349   :  { %2309 = vmatprep.subr.mxu0 %v2542_v6 }
 0x34a   :  { %2310 = vmatpush3.msra.mxu0 %v1693_v47 }
 0x34b   :  { %2311 = vmatprep.subr.mxu0 %v2542_v6 }
 0x34c   :  { %2312 = vmatpush3.msra.mxu0 %v1692_v48 }
 0x34d   :  { %2313 = vmatprep.subr.mxu0 %v2542_v6 }
 0x34e   :  { %2314 = vmatpush3.msra.mxu0 %v1691_v49 }
 0x34f   :  { %2315 = vmatprep.subr.mxu0 %v2542_v6 }
 0x350   :  { %2316 = vmatpush3.msra.mxu0 %v1690_v50 }
 0x351   :  { %2355 = vmatprep.subr.mxu0 %v2542_v6 }
 0x3be   :  { %v1159_v51 = vpop.f32.mrf.mxu1 }
 0x3c0   :  { %v2235_v52 = vpop.f32.mrf.mxu1 }
 0x3c6   :  { %v1232_v53 = vpop.f32.mrf.mxu1 }
 0x3c7   :  { %v1714_v62 = vrot.slane %v1232_v53, 7 }
 0x3c8   :  { %v2242_v54 = vpop.f32.mrf.mxu1 }
 0x3c9   :  { %v1716_v9 = vsel %vm1715_vm4, %v1714_v62, %v1159_v51 }
 0x3ce   :  { %v1305_v55 = vpop.f32.mrf.mxu0 }
 0x3cf   :  { %v1717_v1 = vrot.slane %v1305_v55, 6 }
 0x3d0   :  { %v2249_v57 = vpop.f32.mrf.mxu0 }
 0x3d1   :  { %v1719_v63 = vsel %vm1718_vm5, %v1717_v1, %v1716_v9 }
 0x3d2   :  { %v1378_v59 = vpop.f32.mrf.mxu1 }
 0x3d3   :  { %v1720_v3 = vrot.slane %v1378_v59, 5 }
 0x3d4   :  { %v2256_v61 = vpop.f32.mrf.mxu1 }
 0x3d5   :  { %v1722_v11 = vsel %vm1721_vm6, %v1720_v3, %v1719_v63 }
 0x3d6   :  { %v1524_v0 = vpop.f32.mrf.mxu1 }
 0x3d7   :  { %v1451_v2 = vpop.f32.mrf.mxu0  ;;  %v1726_v13 = vrot.slane %v1524_v0, 3 }
 0x3d8   :  { %v2270_v4 = vpop.f32.mrf.mxu1  ;;  %v1723_v5 = vrot.slane %v1451_v2, 4 }
 0x3d9   :  { %v2263_v7 = vpop.f32.mrf.mxu0 }
 0x3da   :  { %v1725_v14 = vsel %vm1724_vm7, %v1723_v5, %v1722_v11 }
 0x3db   :  { %v1670_v10 = vpop.f32.mrf.mxu1  ;;  %v1728_v20 = vsel %vm1727_vm8, %v1726_v13, %v1725_v14 }
 0x3dc   :  { %v1732_v16 = vrot.slane %v1670_v10, 1 }
 0x3dd   :  { %v2284_v56 = vpop.f32.mrf.mxu1 }
 0x3de   :  { %v1597_v60 = vpop.f32.mrf.mxu0 }
 0x3df   :  { %v1729_v15 = vrot.slane %v1597_v60, 2 }
 0x3e0   :  { %v2277_v23 = vpop.f32.mrf.mxu0 }
 0x3e1   :  { %v1731_v8 = vsel %vm1730_vm9, %v1729_v15, %v1728_v20 }
 0x3e2   :  { %v1734_v18 = vsel %vm1733_vm10, %v1732_v16, %v1731_v8 }
 0x3e3   :  { %2318 = vmatmul.mubr.f32.vlgmr.msra.gmra.mxu0 %v1734_v18 }
 0x3e4   :  { %2356 = vmatpush3.msra.mxu0 %v1892_v12  ;;  %2387 = vmatprep.mubr.msk.f32.mxu0 %vm2543_vm1, %v2542_v6 }
 0x3e5   :  { %2357 = vmatprep.subr.mxu0 %v2542_v6 }
 0x3e6   :  { %2358 = vmatpush3.msra.mxu0 %v1891_v25 }
 0x3e7   :  { %2359 = vmatprep.subr.mxu0 %v2542_v6 }
 0x3e8   :  { %2360 = vmatpush3.msra.mxu0 %v1890_v21 }
 0x3e9   :  { %2361 = vmatprep.subr.mxu0 %v2542_v6 }
 0x3ea   :  { %2362 = vmatpush3.msra.mxu0 %v1889_v26 }
 0x3eb   :  { %2363 = vmatprep.subr.mxu0 %v2542_v6 }
 0x3ec   :  { %2364 = vmatpush3.msra.mxu0 %v1888_v17 }
 0x3ed   :  { %2365 = vmatprep.subr.mxu0 %v2542_v6 }
 0x3ee   :  { %2366 = vmatpush3.msra.mxu0 %v1887_v19 }
 0x3ef   :  { %2367 = vmatprep.subr.mxu0 %v2542_v6 }
 0x3f0   :  { %2368 = vmatpush3.msra.mxu0 %v1886_v22 }
 0x3f1   :  { %2369 = vmatprep.subr.mxu0 %v2542_v6 }
 0x3f2   :  { %2370 = vmatpush3.msra.mxu0 %v1885_v28 }
 0x3f3   :  { %2371 = vmatprep.subr.mxu0 %v2542_v6 }
 0x3f4   :  { %2372 = vmatpush3.msra.mxu0 %v1884_v29 }
 0x3f5   :  { %2373 = vmatprep.subr.mxu0 %v2542_v6 }
 0x3f6   :  { %2374 = vmatpush3.msra.mxu0 %v1883_v31 }
 0x3f7   :  { %2375 = vmatprep.subr.mxu0 %v2542_v6 }
 0x3f8   :  { %2376 = vmatpush3.msra.mxu0 %v1882_v32 }
 0x3f9   :  { %2377 = vmatprep.subr.mxu0 %v2542_v6 }
 0x3fa   :  { %2378 = vmatpush3.msra.mxu0 %v1881_v33 }
 0x3fb   :  { %v1872_v24 = vpop.f32.mrf.mxu1  ;;  %2379 = vmatprep.subr.mxu0 %v2542_v6 }
 0x3fc   :  { %2380 = vmatpush3.msra.mxu0 %v1880_v34 }
 0x3fd   :  { %v2354_v27 = vpop.f32.mrf.mxu1  ;;  %2381 = vmatprep.subr.mxu0 %v2542_v6 }
 0x3fe   :  { %2382 = vmatpush3.msra.mxu0 %v1879_v30 }
 0x3ff   :  { %2383 = vmatprep.subr.mxu0 %v2542_v6 }
 0x400   :  { %2384 = vmatpush3.msra.mxu0 %v1878_v35 }
 0x401   :  { %2385 = vmatprep.subr.mxu0 %v2542_v6 }
 0x402   :  { %2386 = vmatpush3.msra.mxu0 %v1877_v36 }
 0x4a3   :  { %v1802_v37 = vpop.f32.mrf.mxu0 }
 0x4a4   :  { %v1873_v38 = vadd.f32 %v1872_v24, %v1802_v37 }
 0x4a5   :  { %v2319_v39 = vpop.f32.mrf.mxu0 }
 0x4a6   :  { %2466 = vtanh.f32 %v1873_v38 }
 0x4b3   :  { %v2467_v40 = vpop.eup %2466 }
 0x4b4   :  { %2388 = vmatmul.mubr.f32.vlgmr.msra.gmra.mxu0 %v2467_v40 }
 0x574   :  { %v1966_v41 = vpop.f32.mrf.mxu0 }
 0x575   :  { %v1967_v42 = vadd.f32 %v2023_v58, %v1966_v41 }
 0x576   :  { %v2389_v43 = vpop.f32.mrf.mxu0 }
 0x577   :  { %1970 = vmax.xlane.f32.xlu0 %v1967_v42 }
 0x600   :  { %v1971_v44 = vpop.xlane.xlu0 %1970 }
 0x601   :  { %v1972_v45 = vsub.f32 %v1967_v42, %v1971_v44 }
 0x603   :  { %v1973_v46 = vmul.f32 1.442695, %v1972_v45 }
 0x605   :  { %2468 = vpow2.f32 %v1973_v46 }
 0x612   :  { %v2469_v6 = vpop.eup %2468 }
 0x613   :  { %1975 = vadd.xlane.f32.xlu1 %v2469_v6 }
 0x69c   :  { %v1976_v47 = vpop.xlane.xlu1 %1975 }
 0x69d   :  { %2470 = vrcp.f32 %v1976_v47 }
 0x6aa   :  { %v2471_v48 = vpop.eup %2470 }
 0x6ab   :  { %v1979_v49 = vmul.f32 %v2471_v48, %v2469_v6 }
 0x6ad   :  { %1980 = vst [vmem:[#allocation7] sm:$0xff] %v1979_v49 }
 0x6ae   :  { %2523 = shalt.err (!%p2520_p0)
}
 0x6af   :  { %1990 = dma.vmem_to_hbm [thread:$0]  %s1988_s3, 128, %s3022_s10, [#allocation4]  }
 0x6b0   :  { %2536 = dma.done.wait [#allocation4], 128  }
 0x6b1   :  { %2537 = vsyncadd [#allocation4], 4294967168 }
 0x6b2   :  { %1994 = vsyncpa [#allocation3], 1 }
 0x6b3   :  { %1995 = vsyncpa [#allocation6], 1 }
 0x6b4   :  { %1996 = vsyncpa [#allocation4], 1 }

</bundles_post_ra>
